<compile_context>
chip_gen: v5e
topology: v5e:2x2
jax: 0.10.0
libtpu: 0.0.40
codegen_flags: <defaults>
</compile_context>

<pallas_src>
import math
import jax
import jax.numpy as jnp
from jax import lax
from jax.experimental import pallas as pl
from jax.experimental.pallas import tpu as pltpu

_LANE = 128


# ----------------------------------------------------------------------------
# Fused kernel: per (batch, Lq-tile) -> Q projection + per-head softmax
# attention + accumulated output projection.  K projection cached per batch.
# ----------------------------------------------------------------------------
def _make_fused_attn_kernel(n_head, d_pad, emit_score, mm_dtype):
    H, Dp = n_head, d_pad

    def kernel(k_ref, q_ref, wk_ref, bk_ref, wq_ref, bq_ref, wp_ref, bp_ref,
               *out_and_scratch):
        if emit_score:
            out_ref, score_ref, kx_ref = out_and_scratch
        else:
            out_ref, kx_ref = out_and_scratch

        qi = pl.program_id(1)

        # K projection once per batch (qi is the inner, "arbitrary" axis, so the
        # VMEM scratch carries across Lq tiles of the same batch).
        @pl.when(qi == 0)
        def _():
            k2 = k_ref[0]                                           # (Lk, E)
            kx_ref[...] = jnp.dot(k2, wk_ref[...],
                                  preferred_element_type=jnp.float32) + bk_ref[...]

        # Q projection for this Lq tile (single lane-dense GEMM, N = H*Dp).
        q2 = q_ref[0]                                               # (tq, E)
        qx = jnp.dot(q2, wq_ref[...],
                     preferred_element_type=jnp.float32) + bq_ref[...]

        # Hoisted weight cast for the (optional) bf16 MXU path.
        wp = wp_ref[...].astype(mm_dtype)                           # (H*Dp, O)

        tq = q2.shape[0]
        O = wp_ref.shape[1]
        y = jnp.zeros((tq, O), jnp.float32)                         # accumulator

        for h in range(H):                                          # static unroll
            # Lane-tile-aligned head slices (Dp is a multiple of 128) -> free views.
            kh = kx_ref[:, h * Dp:(h + 1) * Dp]                     # (Lk, Dp)
            qh = qx[:, h * Dp:(h + 1) * Dp]                         # (tq, Dp)

            # QK^T in exact f32 (contraction over Dp, no materialized transpose).
            s = lax.dot_general(qh, kh, (((1,), (1,)), ((), ())),
                                preferred_element_type=jnp.float32)  # (tq, Lk)
            s = s - jnp.max(s, axis=-1, keepdims=True)              # stable softmax
            e = jnp.exp(s)
            p = e * (1.0 / jnp.sum(e, axis=-1, keepdims=True))      # exact f32

            if emit_score:
                score_ref[h, 0] = p.astype(score_ref.dtype)

            # P.V and the output projection may run with bf16 MXU operands
            # (f32 accumulate); the padded columns of kh/wp are exact zeros.
            oh = jnp.dot(p.astype(mm_dtype), kh.astype(mm_dtype),
                         preferred_element_type=jnp.float32)        # (tq, Dp)
            y = y + jnp.dot(oh.astype(mm_dtype), wp[h * Dp:(h + 1) * Dp, :],
                            preferred_element_type=jnp.float32)     # (tq, O)

        out_ref[0] = (y + bp_ref[...]).astype(out_ref.dtype)

    return kernel


def _vmem_limit_bytes(Lk, tq, E, HDp, O, H, emit_score):
    """Generous per-step VMEM footprint estimate -> explicit scoped limit."""
    f32 = 4
    weights = (2 * E * HDp + HDp * O + 2 * HDp + O) * f32          # resident
    io = 2 * (Lk * E + tq * E + tq * O) * f32                      # double-buffered
    if emit_score:
        io += 2 * (H * tq * Lk) * f32
    scratch = Lk * HDp * f32                                       # kx cache
    interm = (2 * tq * HDp + H * tq * max(Lk, _LANE) + tq * O) * f32
    need = weights + io + scratch + interm
    # 3x headroom, floor 32 MiB (safe on all gens), cap at v7x's 64 MiB physical.
    return int(min(max(3 * need, 32 << 20), 64 << 20))


def _choose_q_tile(Lq, q_tile_max=256):
    if Lq <= q_tile_max:
        return Lq
    for cand in range(q_tile_max, 7, -1):
        if Lq % cand == 0 and cand % 8 == 0:
            return cand
    return Lq


def attention_forward(k, q, params, n_head, hidden_dim, *,
                      return_score=True, matmul_dtype=jnp.float32):
    """k: (B, Lk, E) f32, q: (B, Lq, E) f32. Returns (output, score_or_None)."""
    if k.ndim == 2:
        k = k[:, None, :]
    if q.ndim == 2:
        q = q[:, None, :]
    B, Lk, E = k.shape
    _, Lq, _ = q.shape
    H, D = n_head, hidden_dim
    O = params["w_proj"].shape[1]

    # Pad per-head width D -> Dp (multiple of 128) so head slices are tile
    # aligned.  Padded weight columns / bias entries / proj rows are zero, so
    # results are bit-compatible with the unpadded math.
    Dp = ((D + _LANE - 1) // _LANE) * _LANE
    HDp = H * Dp

    def pad_kq(w, b):
        w3 = w.reshape(E, H, D)
        b2 = b.reshape(H, D)
        wp = jnp.zeros((E, H, Dp), w.dtype).at[:, :, :D].set(w3).reshape(E, HDp)
        bp = jnp.zeros((H, Dp), b.dtype).at[:, :D].set(b2).reshape(1, HDp)
        return wp, bp

    wk_p, bk_p = pad_kq(params["w_k"], params["b_k"])
    wq_p, bq_p = pad_kq(params["w_q"], params["b_q"])
    wpr = params["w_proj"].reshape(H, D, O)
    wp_p = jnp.zeros((H, Dp, O), wpr.dtype).at[:, :D, :].set(wpr).reshape(HDp, O)
    bp_p = params["b_proj"].reshape(1, O)

    tq = _choose_q_tile(Lq)
    n_qt = Lq // tq

    kernel = _make_fused_attn_kernel(H, Dp, return_score, matmul_dtype)

    out_struct = jax.ShapeDtypeStruct((B, Lq, O), jnp.float32)
    out_spec = pl.BlockSpec((1, tq, O), lambda b, qi: (b, qi, 0))
    if return_score:
        out_shape = (out_struct,
                     jax.ShapeDtypeStruct((H, B, Lq, Lk), jnp.float32))
        out_specs = (out_spec,
                     pl.BlockSpec((H, 1, tq, Lk), lambda b, qi: (0, b, qi, 0)))
    else:
        out_shape = out_struct
        out_specs = out_spec

    results = pl.pallas_call(
        kernel,
        out_shape=out_shape,
        grid_spec=pltpu.PrefetchScalarGridSpec(
            num_scalar_prefetch=0,
            grid=(B, n_qt),
            in_specs=[
                pl.BlockSpec((1, Lk, E), lambda b, qi: (b, 0, 0)),   # k (once/batch)
                pl.BlockSpec((1, tq, E), lambda b, qi: (b, qi, 0)),  # q tile
                pl.BlockSpec((E, HDp), lambda b, qi: (0, 0)),        # Wk (resident)
                pl.BlockSpec((1, HDp), lambda b, qi: (0, 0)),        # bk
                pl.BlockSpec((E, HDp), lambda b, qi: (0, 0)),        # Wq
                pl.BlockSpec((1, HDp), lambda b, qi: (0, 0)),        # bq
                pl.BlockSpec((HDp, O), lambda b, qi: (0, 0)),        # Wproj
                pl.BlockSpec((1, O), lambda b, qi: (0, 0)),          # bproj
            ],
            out_specs=out_specs,
            scratch_shapes=[pltpu.VMEM((Lk, HDp), jnp.float32)],     # kx cache
        ),
        compiler_params=pltpu.CompilerParams(
            dimension_semantics=("parallel", "arbitrary"),
            vmem_limit_bytes=_vmem_limit_bytes(Lk, tq, E, HDp, O, H, return_score)),
    )(k, q, wk_p, bk_p, wq_p, bq_p, wp_p, bp_p)

    if return_score:
        out, score = results
        # (H, B, Lq, Lk) -> (H*B, Lq, Lk): free reshape, torch's head-major stacking.
        return out, score.reshape(H * B, Lq, Lk)
    return results, None


def init_params(key, embed_dim, hidden_dim, n_head, out_dim):
    """Deterministic init mirroring nn.Linear default U(-1/sqrt(fan_in), ...)."""
    ks = jax.random.split(key, 6)
    hd = n_head * hidden_dim

    def lin(kw, kb, fan_in, fan_out):
        bound = 1.0 / math.sqrt(fan_in)
        w = jax.random.uniform(kw, (fan_in, fan_out), jnp.float32, -bound, bound)
        b = jax.random.uniform(kb, (fan_out,), jnp.float32, -bound, bound)
        return w, b

    w_k, b_k = lin(ks[0], ks[1], embed_dim, hd)
    w_q, b_q = lin(ks[2], ks[3], embed_dim, hd)
    w_proj, b_proj = lin(ks[4], ks[5], hd, out_dim)
    return {"w_k": w_k, "b_k": b_k, "w_q": w_q, "b_q": b_q,
            "w_proj": w_proj, "b_proj": b_proj}


def _reference(k, q, params, n_head, hidden_dim):
    """Plain-JAX reference of the PyTorch forward (dot_product, dropout=0)."""
    B, Lk, E = k.shape
    _, Lq, _ = q.shape
    H, D = n_head, hidden_dim
    kx = (k @ params["w_k"] + params["b_k"]).reshape(B, Lk, H, D)
    kx = kx.transpose(2, 0, 1, 3).reshape(H * B, Lk, D)
    qx = (q @ params["w_q"] + params["b_q"]).reshape(B, Lq, H, D)
    qx = qx.transpose(2, 0, 1, 3).reshape(H * B, Lq, D)
    score = jax.nn.softmax(jnp.einsum("bqd,bkd->bqk", qx, kx), axis=-1)
    out = jnp.einsum("bqk,bkd->bqd", score, kx)
    out = jnp.concatenate(jnp.split(out, H, axis=0), axis=-1)   # (B, Lq, H*D)
    out = out @ params["w_proj"] + params["b_proj"]
    return out, score


if __name__ == "__main__":
    B, Lk, Lq = 2, 8, 8
    embed_dim = 32
    n_head = 2
    hidden_dim = 16          # n_head * hidden_dim == embed_dim
    out_dim = embed_dim

    key = jax.random.PRNGKey(0)
    pkey, kkey, qkey = jax.random.split(key, 3)
    params = init_params(pkey, embed_dim, hidden_dim, n_head, out_dim)

    k = jax.random.normal(kkey, (B, Lk, embed_dim), jnp.float32)
    q = jax.random.normal(qkey, (B, Lq, embed_dim), jnp.float32)

    ref_out, ref_score = _reference(k, q, params, n_head, hidden_dim)

    # 1) Exact-f32 MXU path: matches the f32 reference to tight tolerance.
    out, score = attention_forward(k, q, params, n_head, hidden_dim)
    out, score = jax.block_until_ready((out, score))
    assert out.shape == (B, Lq, out_dim)
    assert score.shape == (n_head * B, Lq, Lk)
    assert jnp.allclose(out, ref_out, atol=1e-4, rtol=1e-4)
    assert jnp.allclose(score, ref_score, atol=1e-5, rtol=1e-5)

    # 2) bf16 MXU fast path (P.V + output projection in bf16; QK^T / softmax /
    #    projections stay f32, so scores are unchanged; output gets bf16 tol).
    out_bf, score_bf = attention_forward(k, q, params, n_head, hidden_dim,
                                         matmul_dtype=jnp.bfloat16)
    out_bf, score_bf = jax.block_until_ready((out_bf, score_bf))
    assert jnp.allclose(score_bf, ref_score, atol=1e-5, rtol=1e-5)
    assert jnp.allclose(out_bf, ref_out, atol=5e-2, rtol=5e-2)

    # 3) Score-free variant (drops the dominant HBM writeback).
    out_ns, _ = attention_forward(k, q, params, n_head, hidden_dim,
                                  return_score=False)
    out_ns = jax.block_until_ready(out_ns)
    assert jnp.allclose(out_ns, ref_out, atol=1e-4, rtol=1e-4)

    print("KERNEL_OK")
</pallas_src>

<mosaic_0001>
module attributes {stable_mosaic.version = 11 : i64} {
  func.func @kernel(%arg0: i32, %arg1: i32, %arg2: memref<1x8x32xf32, #tpu.memory_space<vmem>>, %arg3: memref<1x8x32xf32, #tpu.memory_space<vmem>>, %arg4: memref<32x256xf32, #tpu.memory_space<vmem>>, %arg5: memref<1x256xf32, #tpu.memory_space<vmem>>, %arg6: memref<32x256xf32, #tpu.memory_space<vmem>>, %arg7: memref<1x256xf32, #tpu.memory_space<vmem>>, %arg8: memref<256x32xf32, #tpu.memory_space<vmem>>, %arg9: memref<1x32xf32, #tpu.memory_space<vmem>>, %arg10: memref<1x8x32xf32, #tpu.memory_space<vmem>>, %arg11: memref<2x1x8x8xf32, #tpu.memory_space<vmem>>, %arg12: memref<8x256xf32, #tpu.memory_space<vmem>>) attributes {dimension_semantics = [#tpu.dimension_semantics<parallel>, #tpu.dimension_semantics<arbitrary>], iteration_bounds = array<i64: 2, 1>, scalar_prefetch = 0 : i64, scratch_operands = 1 : i64, tpu.core_type = #tpu.core_type<tc>, window_params = [{transform_indices = @transform_0, window_bounds = array<i64: 1, 8, 32>}, {transform_indices = @transform_1, window_bounds = array<i64: 1, 8, 32>}, {pipeline_mode = #tpu.pipeline_mode<synchronous>, transform_indices = @transform_2, window_bounds = array<i64: 32, 256>}, {pipeline_mode = #tpu.pipeline_mode<synchronous>, transform_indices = @transform_3, window_bounds = array<i64: 1, 256>}, {pipeline_mode = #tpu.pipeline_mode<synchronous>, transform_indices = @transform_4, window_bounds = array<i64: 32, 256>}, {pipeline_mode = #tpu.pipeline_mode<synchronous>, transform_indices = @transform_5, window_bounds = array<i64: 1, 256>}, {pipeline_mode = #tpu.pipeline_mode<synchronous>, transform_indices = @transform_6, window_bounds = array<i64: 256, 32>}, {pipeline_mode = #tpu.pipeline_mode<synchronous>, transform_indices = @transform_7, window_bounds = array<i64: 1, 32>}, {transform_indices = @transform_8, window_bounds = array<i64: 1, 8, 32>}, {transform_indices = @transform_9, window_bounds = array<i64: 2, 1, 8, 8>}]} {
    %c0_i32 = arith.constant 0 : i32
    %0 = arith.cmpi eq, %arg1, %c0_i32 : i32
    %1 = arith.extui %0 : i1 to i32
    %c0_i32_0 = arith.constant 0 : i32
    %2 = arith.cmpi ne, %1, %c0_i32_0 : i32
    scf.if %2 {
      %c0_37 = arith.constant 0 : index
      %c0_38 = arith.constant 0 : index
      %c0_39 = arith.constant 0 : index
      %60 = vector.load %arg2[%c0_37, %c0_38, %c0_39] : memref<1x8x32xf32, #tpu.memory_space<vmem>>, vector<1x8x32xf32>
      %61 = vector.shape_cast %60 : vector<1x8x32xf32> to vector<8x32xf32>
      %c0_40 = arith.constant 0 : index
      %c0_41 = arith.constant 0 : index
      %62 = vector.load %arg4[%c0_40, %c0_41] : memref<32x256xf32, #tpu.memory_space<vmem>>, vector<32x256xf32>
      %cst_42 = arith.constant dense<0.000000e+00> : vector<8x256xf32>
      %63 = tpu.matmul %61, %62, %cst_42 {dimension_numbers = #tpu.dot_dimension_numbers<[1], [0], [0], [1], [0, 0, 1, 1], [], []>} : vector<8x32xf32>, vector<32x256xf32>, vector<8x256xf32> -> vector<8x256xf32>
      %c0_43 = arith.constant 0 : index
      %c0_44 = arith.constant 0 : index
      %64 = vector.load %arg5[%c0_43, %c0_44] : memref<1x256xf32, #tpu.memory_space<vmem>>, vector<1x256xf32>
      %65 = vector.broadcast %64 : vector<1x256xf32> to vector<8x256xf32>
      %66 = arith.addf %63, %65 : vector<8x256xf32>
      %c0_45 = arith.constant 0 : index
      %c0_46 = arith.constant 0 : index
      %67 = vector.load %arg12[%c0_45, %c0_46] : memref<8x256xf32, #tpu.memory_space<vmem>>, vector<8x256xf32>
      tpu.vector_store %arg12[%c0_45, %c0_46], %66 {strides = array<i32>} : memref<8x256xf32, #tpu.memory_space<vmem>>, vector<8x256xf32>,
    } else {
    }
    %c0 = arith.constant 0 : index
    %c0_1 = arith.constant 0 : index
    %c0_2 = arith.constant 0 : index
    %3 = vector.load %arg3[%c0, %c0_1, %c0_2] : memref<1x8x32xf32, #tpu.memory_space<vmem>>, vector<1x8x32xf32>
    %4 = vector.shape_cast %3 : vector<1x8x32xf32> to vector<8x32xf32>
    %c0_3 = arith.constant 0 : index
    %c0_4 = arith.constant 0 : index
    %5 = vector.load %arg6[%c0_3, %c0_4] : memref<32x256xf32, #tpu.memory_space<vmem>>, vector<32x256xf32>
    %cst = arith.constant dense<0.000000e+00> : vector<8x256xf32>
    %6 = tpu.matmul %4, %5, %cst {dimension_numbers = #tpu.dot_dimension_numbers<[1], [0], [0], [1], [0, 0, 1, 1], [], []>} : vector<8x32xf32>, vector<32x256xf32>, vector<8x256xf32> -> vector<8x256xf32>
    %c0_5 = arith.constant 0 : index
    %c0_6 = arith.constant 0 : index
    %7 = vector.load %arg7[%c0_5, %c0_6] : memref<1x256xf32, #tpu.memory_space<vmem>>, vector<1x256xf32>
    %8 = vector.broadcast %7 : vector<1x256xf32> to vector<8x256xf32>
    %9 = arith.addf %6, %8 : vector<8x256xf32>
    %c0_7 = arith.constant 0 : index
    %c0_8 = arith.constant 0 : index
    %10 = vector.load %arg8[%c0_7, %c0_8] : memref<256x32xf32, #tpu.memory_space<vmem>>, vector<256x32xf32>
    %cst_9 = arith.constant 0.000000e+00 : f32
    %11 = vector.broadcast %cst_9 : f32 to vector<8x32xf32>
    %c0_10 = arith.constant 0 : index
    %c0_11 = arith.constant 0 : index
    %12 = vector.load %arg12[%c0_10, %c0_11] : memref<8x256xf32, #tpu.memory_space<vmem>>, vector<8x128xf32>
    %13 = vector.extract_strided_slice %9 {offsets = [0, 0], sizes = [8, 128], strides = [1, 1]} : vector<8x256xf32> to vector<8x128xf32>
    %cst_12 = arith.constant dense<0.000000e+00> : vector<8x8xf32>
    %14 = tpu.matmul %13, %12, %cst_12 {dimension_numbers = #tpu.dot_dimension_numbers<[1], [1], [0], [0], [0, 0, 1, 0], [], []>} : vector<8x128xf32>, vector<8x128xf32>, vector<8x8xf32> -> vector<8x8xf32>
    %cst_13 = arith.constant dense<0xFF800000> : vector<8xf32>
    %15 = vector.multi_reduction <maximumf>, %14, %cst_13 [1] : vector<8x8xf32> to vector<8xf32>
    %16 = vector.shape_cast %15 : vector<8xf32> to vector<8x1xf32>
    %17 = vector.broadcast %16 : vector<8x1xf32> to vector<8x8xf32>
    %18 = arith.subf %14, %17 : vector<8x8xf32>
    %19 = math.exp %18 : vector<8x8xf32>
    %cst_14 = arith.constant dense<0.000000e+00> : vector<8xf32>
    %20 = vector.multi_reduction <add>, %19, %cst_14 [1] : vector<8x8xf32> to vector<8xf32>
    %21 = vector.shape_cast %20 : vector<8xf32> to vector<8x1xf32>
    %cst_15 = arith.constant 1.000000e+00 : f32
    %22 = vector.broadcast %cst_15 : f32 to vector<8x1xf32>
    %23 = arith.divf %22, %21 : vector<8x1xf32>
    %24 = vector.broadcast %23 : vector<8x1xf32> to vector<8x8xf32>
    %25 = arith.mulf %19, %24 : vector<8x8xf32>
    %c0_16 = arith.constant 0 : index
    %c0_17 = arith.constant 0 : index
    %c0_18 = arith.constant 0 : index
    %c0_19 = arith.constant 0 : index
    %26 = vector.load %arg11[%c0_16, %c0_17, %c0_18, %c0_19] : memref<2x1x8x8xf32, #tpu.memory_space<vmem>>, vector<1x1x8x8xf32>
    %27 = vector.shape_cast %26 : vector<1x1x8x8xf32> to vector<8x8xf32>
    %28 = vector.shape_cast %25 : vector<8x8xf32> to vector<1x1x8x8xf32>
    tpu.vector_store %arg11[%c0_16, %c0_17, %c0_18, %c0_19], %28 {strides = array<i32>} : memref<2x1x8x8xf32, #tpu.memory_space<vmem>>, vector<1x1x8x8xf32>,
    %cst_20 = arith.constant dense<0.000000e+00> : vector<8x128xf32>
    %29 = tpu.matmul %25, %12, %cst_20 {dimension_numbers = #tpu.dot_dimension_numbers<[1], [0], [0], [1], [0, 0, 1, 1], [], []>} : vector<8x8xf32>, vector<8x128xf32>, vector<8x128xf32> -> vector<8x128xf32>
    %30 = vector.extract_strided_slice %10 {offsets = [0, 0], sizes = [128, 32], strides = [1, 1]} : vector<256x32xf32> to vector<128x32xf32>
    %cst_21 = arith.constant dense<0.000000e+00> : vector<8x32xf32>
    %31 = tpu.matmul %29, %30, %cst_21 {dimension_numbers = #tpu.dot_dimension_numbers<[1], [0], [0], [1], [0, 0, 1, 1], [], []>} : vector<8x128xf32>, vector<128x32xf32>, vector<8x32xf32> -> vector<8x32xf32>
    %32 = arith.addf %11, %31 : vector<8x32xf32>
    %c0_22 = arith.constant 0 : index
    %c128 = arith.constant 128 : index
    %33 = vector.load %arg12[%c0_22, %c128] : memref<8x256xf32, #tpu.memory_space<vmem>>, vector<8x128xf32>
    %34 = vector.extract_strided_slice %9 {offsets = [0, 128], sizes = [8, 128], strides = [1, 1]} : vector<8x256xf32> to vector<8x128xf32>
    %cst_23 = arith.constant dense<0.000000e+00> : vector<8x8xf32>
    %35 = tpu.matmul %34, %33, %cst_23 {dimension_numbers = #tpu.dot_dimension_numbers<[1], [1], [0], [0], [0, 0, 1, 0], [], []>} : vector<8x128xf32>, vector<8x128xf32>, vector<8x8xf32> -> vector<8x8xf32>
    %cst_24 = arith.constant dense<0xFF800000> : vector<8xf32>
    %36 = vector.multi_reduction <maximumf>, %35, %cst_24 [1] : vector<8x8xf32> to vector<8xf32>
    %37 = vector.shape_cast %36 : vector<8xf32> to vector<8x1xf32>
    %38 = vector.broadcast %37 : vector<8x1xf32> to vector<8x8xf32>
    %39 = arith.subf %35, %38 : vector<8x8xf32>
    %40 = math.exp %39 : vector<8x8xf32>
    %cst_25 = arith.constant dense<0.000000e+00> : vector<8xf32>
    %41 = vector.multi_reduction <add>, %40, %cst_25 [1] : vector<8x8xf32> to vector<8xf32>
    %42 = vector.shape_cast %41 : vector<8xf32> to vector<8x1xf32>
    %cst_26 = arith.constant 1.000000e+00 : f32
    %43 = vector.broadcast %cst_26 : f32 to vector<8x1xf32>
    %44 = arith.divf %43, %42 : vector<8x1xf32>
    %45 = vector.broadcast %44 : vector<8x1xf32> to vector<8x8xf32>
    %46 = arith.mulf %40, %45 : vector<8x8xf32>
    %c1 = arith.constant 1 : index
    %c0_27 = arith.constant 0 : index
    %c0_28 = arith.constant 0 : index
    %c0_29 = arith.constant 0 : index
    %47 = vector.load %arg11[%c1, %c0_27, %c0_28, %c0_29] : memref<2x1x8x8xf32, #tpu.memory_space<vmem>>, vector<1x1x8x8xf32>
    %48 = vector.shape_cast %47 : vector<1x1x8x8xf32> to vector<8x8xf32>
    %49 = vector.shape_cast %46 : vector<8x8xf32> to vector<1x1x8x8xf32>
    tpu.vector_store %arg11[%c1, %c0_27, %c0_28, %c0_29], %49 {strides = array<i32>} : memref<2x1x8x8xf32, #tpu.memory_space<vmem>>, vector<1x1x8x8xf32>,
    %cst_30 = arith.constant dense<0.000000e+00> : vector<8x128xf32>
    %50 = tpu.matmul %46, %33, %cst_30 {dimension_numbers = #tpu.dot_dimension_numbers<[1], [0], [0], [1], [0, 0, 1, 1], [], []>} : vector<8x8xf32>, vector<8x128xf32>, vector<8x128xf32> -> vector<8x128xf32>
    %51 = vector.extract_strided_slice %10 {offsets = [128, 0], sizes = [128, 32], strides = [1, 1]} : vector<256x32xf32> to vector<128x32xf32>
    %cst_31 = arith.constant dense<0.000000e+00> : vector<8x32xf32>
    %52 = tpu.matmul %50, %51, %cst_31 {dimension_numbers = #tpu.dot_dimension_numbers<[1], [0], [0], [1], [0, 0, 1, 1], [], []>} : vector<8x128xf32>, vector<128x32xf32>, vector<8x32xf32> -> vector<8x32xf32>
    %53 = arith.addf %32, %52 : vector<8x32xf32>
    %c0_32 = arith.constant 0 : index
    %c0_33 = arith.constant 0 : index
    %54 = vector.load %arg9[%c0_32, %c0_33] : memref<1x32xf32, #tpu.memory_space<vmem>>, vector<1x32xf32>
    %55 = vector.broadcast %54 : vector<1x32xf32> to vector<8x32xf32>
    %56 = arith.addf %53, %55 : vector<8x32xf32>
    %c0_34 = arith.constant 0 : index
    %c0_35 = arith.constant 0 : index
    %c0_36 = arith.constant 0 : index
    %57 = vector.load %arg10[%c0_34, %c0_35, %c0_36] : memref<1x8x32xf32, #tpu.memory_space<vmem>>, vector<1x8x32xf32>
    %58 = vector.shape_cast %57 : vector<1x8x32xf32> to vector<8x32xf32>
    %59 = vector.shape_cast %56 : vector<8x32xf32> to vector<1x8x32xf32>
    tpu.vector_store %arg10[%c0_34, %c0_35, %c0_36], %59 {strides = array<i32>} : memref<1x8x32xf32, #tpu.memory_space<vmem>>, vector<1x8x32xf32>,
    return
  }
  func.func @transform_0(%arg0: i32, %arg1: i32) -> (i32, i32, i32) {
    %c0_i32 = arith.constant 0 : i32
    %c0_i32_0 = arith.constant 0 : i32
    %c0_i32_1 = arith.constant 0 : i32
    return %arg0, %c0_i32, %c0_i32_0 : i32, i32, i32
  }
  func.func @transform_1(%arg0: i32, %arg1: i32) -> (i32, i32, i32) {
    %c0_i32 = arith.constant 0 : i32
    %c0_i32_0 = arith.constant 0 : i32
    return %arg0, %arg1, %c0_i32 : i32, i32, i32
  }
  func.func @transform_2(%arg0: i32, %arg1: i32) -> (i32, i32) {
    %c0_i32 = arith.constant 0 : i32
    %c0_i32_0 = arith.constant 0 : i32
    %c0_i32_1 = arith.constant 0 : i32
    return %c0_i32, %c0_i32_0 : i32, i32
  }
  func.func @transform_3(%arg0: i32, %arg1: i32) -> (i32, i32) {
    %c0_i32 = arith.constant 0 : i32
    %c0_i32_0 = arith.constant 0 : i32
    %c0_i32_1 = arith.constant 0 : i32
    return %c0_i32, %c0_i32_0 : i32, i32
  }
  func.func @transform_4(%arg0: i32, %arg1: i32) -> (i32, i32) {
    %c0_i32 = arith.constant 0 : i32
    %c0_i32_0 = arith.constant 0 : i32
    %c0_i32_1 = arith.constant 0 : i32
    return %c0_i32, %c0_i32_0 : i32, i32
  }
  func.func @transform_5(%arg0: i32, %arg1: i32) -> (i32, i32) {
    %c0_i32 = arith.constant 0 : i32
    %c0_i32_0 = arith.constant 0 : i32
    %c0_i32_1 = arith.constant 0 : i32
    return %c0_i32, %c0_i32_0 : i32, i32
  }
  func.func @transform_6(%arg0: i32, %arg1: i32) -> (i32, i32) {
    %c0_i32 = arith.constant 0 : i32
    %c0_i32_0 = arith.constant 0 : i32
    %c0_i32_1 = arith.constant 0 : i32
    return %c0_i32, %c0_i32_0 : i32, i32
  }
  func.func @transform_7(%arg0: i32, %arg1: i32) -> (i32, i32) {
    %c0_i32 = arith.constant 0 : i32
    %c0_i32_0 = arith.constant 0 : i32
    %c0_i32_1 = arith.constant 0 : i32
    return %c0_i32, %c0_i32_0 : i32, i32
  }
  func.func @transform_8(%arg0: i32, %arg1: i32) -> (i32, i32, i32) {
    %c0_i32 = arith.constant 0 : i32
    %c0_i32_0 = arith.constant 0 : i32
    return %arg0, %arg1, %c0_i32 : i32, i32, i32
  }
  func.func @transform_9(%arg0: i32, %arg1: i32) -> (i32, i32, i32, i32) {
    %c0_i32 = arith.constant 0 : i32
    %c0_i32_0 = arith.constant 0 : i32
    %c0_i32_1 = arith.constant 0 : i32
    return %c0_i32, %arg0, %arg1, %c0_i32_0 : i32, i32, i32, i32
  }
}

</mosaic_0001>

<bundles_post_ra>
// kernel: tpu_custom_call.1
= control target key start
LH: loop header
LB: loop body
LE: loop exit
PB: predicated region body
PF: predicated region fallthrough
CT: control target
= control target key end

     0   :  { %s1440_s0 = inlined_call_operand.vmem [shape: f32[2,8,32], index: 0, kind: input, shape index: {}]   ;;  %s1441_s1 = inlined_call_operand.vmem [shape: f32[2,8,32], index: 1, kind: input, shape index: {}]   ;;  %s1442_s2 = inlined_call_operand.vmem [shape: f32[32,256], index: 2, kind: input, shape index: {}]   ;;  %s1443_s3 = inlined_call_operand.vmem [shape: f32[1,256], index: 3, kind: input, shape index: {}]   ;;  %s1444_s4 = inlined_call_operand.vmem [shape: f32[32,256], index: 4, kind: input, shape index: {}]   ;;  %s1445_s5 = inlined_call_operand.vmem [shape: f32[1,256], index: 5, kind: input, shape index: {}]   ;;  %s1446_s6 = inlined_call_operand.vmem [shape: f32[256,32], index: 6, kind: input, shape index: {}]   ;;  %s1447_s7 = inlined_call_operand.vmem [shape: f32[1,32], index: 7, kind: input, shape index: {}]   ;;  %s1448_s8 = inlined_call_operand.hbm [shape: f32[2,8,32], index: 8, kind: output, shape index: {0}]   ;;  %s1449_s9 = inlined_call_operand.hbm [shape: f32[2,2,8,8], index: 9, kind: output, shape index: {1}]  }
   0x1   :  { %1451 = sst [smem:[#allocation10_spill]] %s1440_s0 }
   0x2   :  { %1452 = sst [smem:[#allocation11_spill]] %s1441_s1 }
   0x3   :  { %1453 = sst [smem:[#allocation12_spill]] %s1442_s2 }
   0x4   :  { %1454 = sst [smem:[#allocation13_spill]] %s1443_s3 }
   0x5   :  { %1455 = sst [smem:[#allocation14_spill]] %s1444_s4 }
   0x6   :  { %15 = vsyncpa [#allocation4], 0 }
   0x7   :  { %17 = vsyncpa [#allocation4 + $0x1], 0 }
   0x8   :  { %18 = vsyncpa [#allocation6], 0 }
   0x9   :  { %20 = vsyncpa [#allocation6 + $0x1], 0  ;;  %s1142_s30 = smov 0   ;;  %s1144_s10 = smov 0  }
   0xa   :  { %s1146_s11 = smov 0   ;;  %s1148_s12 = smov 0  }
   0xb   :  { %s1150_s13 = smov 0   ;;  %s1152_s14 = smov 0  }
   0xc LB: > { %s883_s15 = sadd.s32 4294967295, %s1087_s14   ;;  %s884_s16 = sadd.s32 4294967294, %s1087_s14   ;;  %s1087_s14 = sphi %s1152_s14, %s26_s14   ;;  %s1083_s13 = sphi %s1150_s13, %s1469_s13   ;;  %s1079_s12 = sphi %s1148_s12, %s1468_s12   ;;  %s1075_s11 = sphi %s1146_s11, %s1467_s11   ;;  %s1071_s10 = sphi %s1144_s10, %s1466_s10   ;;  %s1067_s30 = sphi %s1142_s30, %s1465_s30  }
   0xd   : > { %s38_s17 = sadd.s32 1, %s1083_s13  ;;  %s227_s18 = sadd.s32 1, %s1075_s11 }
   0xe   : > { %p40_p0 = scmp.ge.s32.totalorder %s38_s17, 2  ;;  %p237_p1 = scmp.ne.s32.totalorder %s1075_s11, %s1071_s10 }
   0xf   : > { %p238_p2 = scmp.eq.s32.totalorder %s883_s15, 1  ;;  %p243_p3 = scmp.ne.s32.totalorder %s1071_s10, %s1067_s30 }
  0x10   : > { %s1471_s17 = smov (%p40_p0, %s38_s17), 0  ;;  %p244_p5 = scmp.eq.s32.totalorder %s884_s16, 1 }
  0x11   : > { %1456 = sst [smem:[#allocation9_spill]] %s1471_s17  ;;  %p1182_p4 = por %p238_p2, %p237_p1 }
  0x12   : > { %s222_s20 = ssub.s32 %s1083_s13, %s1471_s17  ;;  %p887_p6 = scmp.ge.s32.totalorder %s1087_s14, 1 }
  0x13   : > { %p225_p7 = scmp.eq.s32.totalorder %s222_s20, 0  ;;  %p1189_p8 = por %p244_p5, %p243_p3 }
  0x14   : > { %p325_p9 = scmp.lt.s32.totalorder %s1087_s14, 3 }
  0x15   : > { %s1195_s22 = scalar_select %p225_p7, %s1075_s11, %s227_s18  }
  0x16   : > { %p326_p10 = pnand %p887_p6, %p325_p9 }
  0x17   : > { %s1459_s2 = sld [smem:[#allocation12_spill]] (!%p326_p10)  ;;  %p372_p11 = scmp.lt.s32.totalorder (!%p326_p10), %s1079_s12, 1 }
  0x18   : > { %329 = sbr.rel (%p326_p10) target bundleno = 848 (0x350), region = 52  ;;  %s1460_s0 = sld [smem:[#allocation10_spill]] (!%p326_p10) }
  0x19   : > { %s1461_s4 = sld [smem:[#allocation14_spill]] (!%p326_p10)  ;;  %s1328_s20 = sand.u32 (!%p326_p10), 1, %s1071_s10  }
  0x1a   : > { %s1462_s1 = sld [smem:[#allocation11_spill]] (!%p326_p10)  ;;  %s889_s28 = sshll.u32 (!%p326_p10), %s1328_s20, 4 }
  0x1b   : > { %s1463_s3 = sld [smem:[#allocation13_spill]] (!%p326_p10)  ;;  %s1354_s26 = scalar_lea.vmem (!%p326_p10), [#allocation5], %s889_s28 }
  0x1c   : > { %s733_s17 = scalar_lea.sflag (!%p326_p10), [#allocation6], %s1328_s20 }
  0x1d   : > { %v394_v0 = vld [vmem:[%s1459_s2 + $0x30] sm:$0xff]  ;;  %v392_v1 = vld [vmem:[%s1459_s2 + $0x20] sm:$0xff]  ;;  %v395_v2 = vld [vmem:[%s1459_s2 + $0x38] sm:$0xff]  ;;  %s373_s16 = scalar_select %p372_p11, %s1079_s12, 1  ;;  %vm402_vm0 = vcmask 261120   ;;  %vm560_vm1 = vcmask 64512  }
  0x1e   : > { %418 = vmatpush.msra.mxu2 %v394_v0  ;;  %v390_v3 = vld [vmem:[%s1459_s2 + $0x10] sm:$0xff]  ;;  %438 = vmatpush.msra.mxu3 %v395_v2  ;;  %v393_v4 = vld [vmem:[%s1459_s2 + $0x28] sm:$0xff]  ;;  %v391_v5 = vld [vmem:[%s1459_s2 + $0x18] sm:$0xff] }
  0x1f   : > { %v388_v6 = vld [vmem:[%s1459_s2] sm:$0xff]  ;;  %s890_s27 = sshll.u32 %s373_s16, 3  ;;  %v389_v7 = vld [vmem:[%s1459_s2 + $0x8] sm:$0xff]  ;;  %v455_v9 = vld [vmem:[%s1461_s4 + $0x30] sm:$0xff]  ;;  %s760_s16 = sshll.u32 %s1354_s26, 4  ;;  %s761_s16 = int_to_ptr.vmem [resolvable:$true] %s760_s16 }
  0x20   : > { %419 = vmatpush.msra.mxu2 %v392_v1  ;;  %439 = vmatpush.msra.mxu3 %v393_v4  ;;  %s375_s15 = scalar_lea.vmem %s1460_s0, %s890_s27  ;;  %v456_v10 = vld [vmem:[%s1461_s4 + $0x38] sm:$0xff]  ;;  %v453_v11 = vld [vmem:[%s1461_s4 + $0x20] sm:$0xff]  ;;  %v454_v12 = vld [vmem:[%s1461_s4 + $0x28] sm:$0xff]  ;;  %s382_s23 = scalar_lea.vmem %s1462_s1, %s890_s27 }
  0x21   : > { %v387_v8 = vld [vmem:[%s375_s15] sm:$0xff]  ;;  %v451_v13 = vld [vmem:[%s1461_s4 + $0x10] sm:$0xff]  ;;  %v452_v14 = vld [vmem:[%s1461_s4 + $0x18] sm:$0xff]  ;;  %s901_s15 = sshll.u32 %s1079_s12, 3  ;;  %s997_s12 = scalar_lea.hbm %s1449_s9, 32 }
  0x22   : > { %420 = vmatpush.msra.mxu2 %v390_v3  ;;  %440 = vmatpush.msra.mxu3 %v391_v5  ;;  %v449_v15 = vld [vmem:[%s1461_s4] sm:$0xff]  ;;  %v450_v17 = vld [vmem:[%s1461_s4 + $0x8] sm:$0xff]  ;;  %v522_v46 = vld [vmem:[%s1446_s6 + $0x78] sm:$0xff]  ;;  %s759_s24 = scalar_lea.hbm %s1449_s9, %s901_s15 }
  0x23   : > { %v448_v16 = vld [vmem:[%s382_s23] sm:$0xff]  ;;  %v521_v47 = vld [vmem:[%s1446_s6 + $0x70] sm:$0xff]  ;;  %701 = vmatpush.msra.mxu1 %v522_v46  ;;  %v538_v48 = vld [vmem:[%s1446_s6 + $0xf8] sm:$0xff]  ;;  %s762_s25 = sshll.u32 %s759_s24, 4  ;;  %s763_s25 = int_to_ptr.hbm [resolvable:$true] %s762_s25 }
  0x24   : > { %421 = vmatpush.msra.mxu2 %v388_v6  ;;  %441 = vmatpush.msra.mxu3 %v389_v7  ;;  %v396_v18 = vld [vmem:[%s1463_s3] sm:$0x3]  ;;  %v520_v49 = vld [vmem:[%s1446_s6 + $0x68] sm:$0xff]  ;;  %v537_v50 = vld [vmem:[%s1446_s6 + $0xf0] sm:$0xff]  ;;  %s991_s27 = sshra.s32 %s763_s25, 4  ;;  %s992_s27 = int_to_ptr.hbm [resolvable:$true] %s991_s27 }
  0x25   : > { %892 = vmatmul.msk.f32.vlgmr.msra.gmra.mxu2 %vm402_vm0, %v387_v8  ;;  %893 = vmatmul.msk.f32.vlgmr.msra.gmra.mxu3 %vm402_vm0, %v387_v8  ;;  %v398_v19 = vperm.slane %v396_v18, 0  ;;  %v399_v20 = vperm.slane %v396_v18, 1  ;;  %v457_v25 = vld [vmem:[%s1445_s5] sm:$0x3]  ;;  %v536_v51 = vld [vmem:[%s1446_s6 + $0xe8] sm:$0xff]  ;;  %v518_v55 = vld [vmem:[%s1446_s6 + $0x58] sm:$0xff]  ;;  %p998_p1 = scmp.lt.s32.totalorder %s992_s27, %s1449_s9 }
  0x26   : > { %479 = vmatpush.msrb.mxu2 %v455_v9  ;;  %499 = vmatpush.msrb.mxu3 %v456_v10  ;;  %v459_v26 = vperm.slane %v457_v25, 0  ;;  %v460_v29 = vperm.slane %v457_v25, 1  ;;  %v519_v53 = vld [vmem:[%s1446_s6 + $0x60] sm:$0xff]  ;;  %v534_v56 = vld [vmem:[%s1446_s6 + $0xd8] sm:$0xff]  ;;  %v517_v57 = vld [vmem:[%s1446_s6 + $0x50] sm:$0xff]  ;;  %s993_s28 = scalar_lea.hbm %s992_s27, 16 }
  0x27   : > { %681 = vmatpush.msra.mxu0 %v538_v48  ;;  %702 = vmatpush.msra.mxu1 %v521_v47  ;;  %v535_v54 = vld [vmem:[%s1446_s6 + $0xe0] sm:$0xff]  ;;  %v533_v58 = vld [vmem:[%s1446_s6 + $0xd0] sm:$0xff]  ;;  %v516_v59 = vld [vmem:[%s1446_s6 + $0x48] sm:$0xff]  ;;  %p994_p12 = scmp.ne.s32.totalorder %s992_s27, %s993_s28  ;;  %p999_p2 = scmp.lt.s32.totalorder %s997_s12, %s993_s28 }
  0x28   : > { %480 = vmatpush.msrb.mxu2 %v453_v11  ;;  %500 = vmatpush.msrb.mxu3 %v454_v12  ;;  %v532_v61 = vld [vmem:[%s1446_s6 + $0xc8] sm:$0xff]  ;;  %v515_v0 = vld [vmem:[%s1446_s6 + $0x40] sm:$0xff]  ;;  %v514_v3 = vld [vmem:[%s1446_s6 + $0x38] sm:$0xff] }
  0x29   : > { %682 = vmatpush.msra.mxu0 %v537_v50  ;;  %703 = vmatpush.msra.mxu1 %v520_v49  ;;  %v531_v1 = vld [vmem:[%s1446_s6 + $0xc0] sm:$0xff]  ;;  %v530_v5 = vld [vmem:[%s1446_s6 + $0xb8] sm:$0xff]  ;;  %v513_v8 = vld [vmem:[%s1446_s6 + $0x30] sm:$0xff]  ;;  %p995_p13 = pnand %p994_p12, %p1182_p4  ;;  %p1000_p3 = por %p999_p2, %p998_p1 }
  0x2a   : > { %481 = vmatpush.msrb.mxu2 %v451_v13  ;;  %501 = vmatpush.msrb.mxu3 %v452_v14  ;;  %v529_v9 = vld [vmem:[%s1446_s6 + $0xb0] sm:$0xff]  ;;  %v512_v11 = vld [vmem:[%s1446_s6 + $0x28] sm:$0xff] }
  0x2b   : > { %683 = vmatpush.msra.mxu0 %v536_v51  ;;  %704 = vmatpush.msra.mxu1 %v519_v53  ;;  %v528_v14 = vld [vmem:[%s1446_s6 + $0xa8] sm:$0xff]  ;;  %v509_v25 = vld [vmem:[%s1446_s6 + $0x10] sm:$0xff]  ;;  %p996_p0 = pneg %p995_p13 }
  0x2c   : > { %482 = vmatpush.msrb.mxu2 %v449_v15  ;;  %502 = vmatpush.msrb.mxu3 %v450_v17  ;;  %v511_v17 = vld [vmem:[%s1446_s6 + $0x20] sm:$0xff] }
  0x2d   : > { %894 = vmatmul.msk.f32.vlgmr.msrb.gmra.mxu2 %vm402_vm0, %v448_v16  ;;  %895 = vmatmul.msk.f32.vlgmr.msrb.gmra.mxu3 %vm402_vm0, %v448_v16  ;;  %p1001_p5 = pnand %p1000_p3, %p996_p0 }
  0x2e   : > { %684 = vmatpush.msra.mxu0 %v535_v54  ;;  %705 = vmatpush.msra.mxu1 %v518_v55 }
  0x30   : > { %685 = vmatpush.msra.mxu0 %v534_v56  ;;  %706 = vmatpush.msra.mxu1 %v517_v57 }
  0x32   : > { %686 = vmatpush.msra.mxu0 %v533_v58  ;;  %707 = vmatpush.msra.mxu1 %v516_v59 }
  0x34   : > { %687 = vmatpush.msra.mxu0 %v532_v61  ;;  %708 = vmatpush.msra.mxu1 %v515_v0 }
  0x36   : > { %688 = vmatpush.msra.mxu0 %v531_v1  ;;  %709 = vmatpush.msra.mxu1 %v514_v3 }
  0x38   : > { %689 = vmatpush.msra.mxu0 %v530_v5  ;;  %710 = vmatpush.msra.mxu1 %v513_v8 }
  0x3a   : > { %690 = vmatpush.msra.mxu0 %v529_v9  ;;  %711 = vmatpush.msra.mxu1 %v512_v11 }
  0x3c   : > { %691 = vmatpush.msra.mxu0 %v528_v14  ;;  %712 = vmatpush.msra.mxu1 %v511_v17 }
  0xa8   : > { %v423_v21 = vpop.f32.mrf.mxu2  ;;  %v443_v23 = vpop.f32.mrf.mxu3 }
  0xa9   : > { %v424_v22 = vadd.f32 %v423_v21, %v398_v19  ;;  %v444_v24 = vadd.f32 %v443_v23, %v399_v20  ;;  %v510_v21 = vld [vmem:[%s1446_s6 + $0x18] sm:$0xff] }
  0xaa   : > { %713 = vmatpush.msra.mxu1 %v510_v21 }
  0xab   : > { %555 = vmatpush.xpose.msra.mxu2 %v424_v22  ;;  %605 = vmatpush.msra.mxu3 %v424_v22 }
  0xac   : > { %714 = vmatpush.msra.mxu1 %v509_v25 }
  0xad   : > { %676 = vmatpush.msrb.mxu3 %v444_v24 }
  0xaf   : > { %626 = vmatpush.xpose.msrb.mxu2 %v444_v24 }
  0xb0   : > { %v484_v27 = vpop.f32.mrf.mxu2  ;;  %v504_v30 = vpop.f32.mrf.mxu3 }
  0xb1   : > { %v485_v28 = vadd.f32 %v484_v27, %v459_v26  ;;  %v505_v31 = vadd.f32 %v504_v30, %v460_v29  ;;  %v508_v27 = vld [vmem:[%s1446_s6 + $0x8] sm:$0xff] }
  0xb2   : > { %715 = vmatpush.msra.mxu1 %v508_v27 }
  0xb3   : > { %556 = vmatmul.f32.vlgmr.msra.gmra.mxu2 %v485_v28 }
  0xbb   : > { %627 = vmatmul.f32.vlgmr.msrb.gmra.mxu2 %v505_v31 }
 0x136   : > { %v557_v32 = vpop.f32.mrf.mxu2 }
 0x137   : > { %v561_v33 = vsel %vm560_vm1, %v557_v32, -inf }
 0x138   : > { %562 = vmax.xlane.f32.xlu0 %v561_v33  ;;  %v507_v33 = vld [vmem:[%s1446_s6] sm:$0xff] }
 0x139   : > { %716 = vmatpush.msra.mxu1 %v507_v33 }
 0x13e   : > { %v628_v34 = vpop.f32.mrf.mxu2 }
 0x13f   : > { %v631_v35 = vsel %vm560_vm1, %v628_v34, -inf }
 0x140   : > { %632 = vmax.xlane.f32.xlu0 %v631_v35  ;;  %v525_v35 = vld [vmem:[%s1446_s6 + $0x90] sm:$0xff] }
 0x1ab   : > { %v563_v36 = vpop.xlane.xlu0 %562 }
 0x1ac   : > { %v564_v37 = vsub.f32 %v557_v32, %v563_v36  ;;  %v527_v32 = vld [vmem:[%s1446_s6 + $0xa0] sm:$0xff]  ;;  %v524_v36 = vld [vmem:[%s1446_s6 + $0x88] sm:$0xff] }
 0x1ad   : > { %692 = vmatpush.msra.mxu0 %v527_v32 }
 0x1ae   : > { %v565_v38 = vmul.f32 1.442695, %v564_v37  ;;  %v523_v37 = vld [vmem:[%s1446_s6 + $0x80] sm:$0xff] }
 0x1b0   : > { %969 = vpow2.f32 %v565_v38 }
 0x1b3   : > { %v633_v39 = vpop.xlane.xlu0 %632 }
 0x1b4   : > { %v634_v40 = vsub.f32 %v628_v34, %v633_v39  ;;  %v526_v34 = vld [vmem:[%s1446_s6 + $0x98] sm:$0xff] }
 0x1b5   : > { %693 = vmatpush.msra.mxu0 %v526_v34 }
 0x1b6   : > { %v1265_v41 = vpop.eup %969  ;;  %v635_v42 = vmul.f32 1.442695, %v634_v40 }
 0x1b7   : > { %v567_v43 = vsel %vm560_vm1, %v1265_v41, 0.0  ;;  %694 = vmatpush.msra.mxu0 %v525_v35 }
 0x1b8   : > { %971 = vpow2.f32 %v635_v42  ;;  %568 = vadd.xlane.f32.xlu1 %v567_v43 }
 0x1b9   : > { %695 = vmatpush.msra.mxu0 %v524_v36 }
 0x1bb   : > { %696 = vmatpush.msra.mxu0 %v523_v37 }
 0x1be   : > { %v1269_v44 = vpop.eup %971 }
 0x1bf   : > { %v637_v45 = vsel %vm560_vm1, %v1269_v44, 0.0 }
 0x1c0   : > { %638 = vadd.xlane.f32.xlu1 %v637_v45 }
 0x22b   : > { %v569_v52 = vpop.xlane.xlu1 %568 }
 0x22c   : > { %973 = vrcp.f32 %v569_v52  ;;  %v581_v4 = vand.u32 2147483648, %v569_v52  ;;  %v579_v7 = vand.u32 2147483647, %v569_v52  ;;  %vm575_vm3 = vweird.f32 %v569_v52 }
 0x22e   : > { %v582_v13 = vor.u32 1.1754944e-38, %v581_v4  ;;  %vm580_vm5 = vcmp.eq.f32.partialorder %v579_v7, 8.507059e+37 }
 0x232   : > { %v974_v60 = vpop.eup %973 }
 0x233   : > { %v571_v62 = vmul.f32 %v974_v60, %v569_v52  ;;  %v639_v63 = vpop.xlane.xlu1 %638  ;;  %vm576_vm2 = vweird.f32 %v974_v60 }
 0x234   : > { %975 = vrcp.f32 %v639_v63  ;;  %vm577_vm4 = vmor %vm575_vm3, %vm576_vm2  ;;  %v651_v22 = vand.u32 2147483648, %v639_v63  ;;  %v649_v24 = vand.u32 2147483647, %v639_v63  ;;  %vm645_vm7 = vweird.f32 %v639_v63 }
 0x235   : > { %v572_v2 = vsub.f32 1.0, %v571_v62 }
 0x236   : > { %v652_v28 = vor.u32 1.1754944e-38, %v651_v22  ;;  %vm650_vm9 = vcmp.eq.f32.partialorder %v649_v24, 8.507059e+37 }
 0x237   : > { %v573_v6 = vmul.f32 %v974_v60, %v572_v2 }
 0x239   : > { %v574_v10 = vadd.f32 %v974_v60, %v573_v6 }
 0x23a   : > { %v976_v12 = vpop.eup %975 }
 0x23b   : > { %v578_v15 = vsel %vm577_vm4, %v974_v60, %v574_v10  ;;  %v641_v16 = vmul.f32 %v976_v12, %v639_v63  ;;  %vm646_vm6 = vweird.f32 %v976_v12 }
 0x23c   : > { %v583_v18 = vsel %vm580_vm5, %v582_v13, %v578_v15  ;;  %vm647_vm8 = vmor %vm645_vm7, %vm646_vm6 }
 0x23d   : > { %v642_v19 = vsub.f32 1.0, %v641_v16  ;;  %v585_v20 = vmul.f32 %v1265_v41, %v583_v18 }
 0x23f   : > { %v643_v23 = vmul.f32 %v976_v12, %v642_v19  ;;  %896 = vmatmul.msk.f32.vlgmr.msra.gmra.mxu3 %vm560_vm1, %v585_v20  ;;  %586 = vst.msk [vmem:[%s1354_s26] sm:$0xff] %vm560_vm1, %v585_v20 }
 0x241   : > { %v644_v26 = vadd.f32 %v976_v12, %v643_v23 }
 0x243   : > { %v648_v29 = vsel %vm647_vm8, %v976_v12, %v644_v26 }
 0x244   : > { %v653_v30 = vsel %vm650_vm9, %v652_v28, %v648_v29 }
 0x245   : > { %v655_v31 = vmul.f32 %v1269_v44, %v653_v30 }
 0x247   : > { %898 = vmatmul.msk.f32.vlgmr.msrb.gmra.mxu3 %vm560_vm1, %v655_v31  ;;  %897 = vst.msk [vmem:[%s1354_s26 + $0x8] sm:$0xff] %vm560_vm1, %v655_v31 }
 0x2c2   : > { %v607_v38 = vpop.f32.mrf.mxu3 }
 0x2c3   : > { %717 = vmatmul.f32.vlgmr.msra.gmra.mxu1 %v607_v38 }
 0x2ca   : > { %v678_v39 = vpop.f32.mrf.mxu3 }
 0x2cb   : > { %697 = vmatmul.f32.vlgmr.msra.gmra.mxu0 %v678_v39 }
 0x2cc   : > { %1004 = shalt.err (!%p1001_p5)
}
 0x2cd   : > { %s1089_s26 = smov 128   ;;  %s1090_s18 = smov 256   ;;  %v968_v40 = vld [vmem:[%s1447_s7] ss:$0 sm:$0xff] }
 0x2ce   : > { %s1091_s23 = smov 8   ;;  %s888_s24 = sshll.u32 %s1328_s20, 3 }
 0x2cf   : > { %906 = dma.vmem_to_hbm [thread:$0]  (%p1182_p4), %s761_s16, 256, %s763_s25, %s733_s17, %s1089_s26, %s1090_s18, %s1091_s23  }
 0x2d0   : > { %s744_s29 = scalar_lea.hbm %s1448_s8, %s901_s15  ;;  %s364_s2 = scalar_lea.vmem [#allocation3], %s888_s24 }
 0x2d1   : > { %s746_s27 = sshll.u32 %s364_s2, 4  ;;  %s748_s28 = sshll.u32 %s744_s29, 4  ;;  %s747_s27 = int_to_ptr.vmem [resolvable:$true] %s746_s27  ;;  %s749_s28 = int_to_ptr.hbm [resolvable:$true] %s748_s28 }
 0x2d2   : > { %s728_s16 = scalar_lea.sflag [#allocation4], %s1328_s20  ;;  %s1019_s25 = sshra.s32 %s749_s28, 4  ;;  %s1020_s25 = int_to_ptr.hbm [resolvable:$true] %s1019_s25 }
 0x2d3   : > { %s1021_s3 = scalar_lea.hbm %s1020_s25, 8  ;;  %s1025_s17 = scalar_lea.hbm %s1448_s8, 16 }
 0x2d4   : > { %p1022_p6 = scmp.ne.s32.totalorder %s1020_s25, %s1021_s3  ;;  %p1026_p10 = scmp.lt.s32.totalorder %s1020_s25, %s1448_s8 }
 0x2d5   : > { %p1027_p11 = scmp.lt.s32.totalorder %s1025_s17, %s1021_s3 }
 0x2d6   : > { %p1023_p7 = pnand %p1022_p6, %p1182_p4 }
 0x2d7   : > { %p1028_p12 = por %p1027_p11, %p1026_p10 }
 0x2d8   : > { %p1024_p9 = pneg %p1023_p7 }
 0x2da   : > { %p1029_p13 = pnand %p1028_p12, %p1024_p9 }
 0x340   : > { %v718_v41 = vpop.f32.mrf.mxu1 }
 0x348   : > { %v698_v42 = vpop.f32.mrf.mxu0 }
 0x349   : > { %v719_v43 = vadd.f32 %v718_v41, %v698_v42 }
 0x34b   : > { %v725_v44 = vadd.f32 %v968_v40, %v719_v43 }
 0x34d   : > { %726 = vst.msk [vmem:[%s364_s2] sm:$0xff] %vm402_vm0, %v725_v44 }
 0x34e   : > { %1032 = shalt.err (!%p1029_p13)
}
 0x34f   : > { %905 = dma.vmem_to_hbm [thread:$0]  (%p1182_p4), %s747_s27, 128, %s749_s28, %s728_s16  }
 0x350 PF: > { %p916_p0 = scmp.ge.s32.totalorder %s1087_s14, 2  ;;  %s777_s20 = sand.u32 1, %s1067_s30  }
 0x351   : > { %s778_s18 = scalar_lea.sflag [#allocation4], %s777_s20 }
 0x352   : > { %p910_p1 = pnand %p916_p0, %p1189_p8 }
 0x354   : > { %p911_p2 = pneg %p910_p1 }
 0x356   : > { %1058 = dma.done.wait (%p911_p2), %s778_s18, 128  }
 0x357   : > { %1060 = vsyncadd (%p911_p2), %s778_s18, 4294967168  ;;  %s788_s23 = scalar_lea.sflag [#allocation6], %s777_s20 }
 0x358   : > { %1062 = dma.done.wait (%p911_p2), %s788_s23, 256  }
 0x359   : > { %1064 = vsyncadd (%p911_p2), %s788_s23, 4294967040  ;;  %s26_s14 = sadd.s32 1, %s1087_s14   ;;  %s1464_s19 = sld [smem:[#allocation9_spill]] }
 0x35a   : > { %p23_p3 = scmp.ge.s32.totalorder %s26_s14, 4   ;;  %s1465_s30 = smov %s1071_s10 }
 0x35b   : > { %s1466_s10 = smov %s1075_s11  ;;  %s1467_s11 = smov %s1195_s22 }
 0x35c   : > { %s1468_s12 = smov %s1083_s13  ;;  %25 = sbr.rel (!%p23_p3) target bundleno = 12 (0xc), region = 112 }
 0x35f   : > { %s1469_s13 = smov %s1464_s19 }
 0x361   :  { %794 = vsyncpa [#allocation4], 1 }
 0x362   :  { %796 = vsyncpa [#allocation4 + $0x1], 1 }
 0x363   :  { %797 = vsyncpa [#allocation6], 1 }
 0x364   :  { %799 = vsyncpa [#allocation6 + $0x1], 1 }

</bundles_post_ra>
